<compile_context>
chip_gen: v7x
topology: tpu7x:2x2x1
jax: 0.10.0
libtpu: 0.0.40
codegen_flags: <defaults>
</compile_context>

<pallas_src>
import functools

import jax
import jax.numpy as jnp
from jax.experimental import pallas as pl
from jax.experimental.pallas import tpu as pltpu

EPS = 1e-5  # PyTorch nn.GroupNorm default


# --------------------------------------------------------------------------
# Hardware-aware sizing helpers
# --------------------------------------------------------------------------
def _vmem_caps():
    """(per-tile byte budget, scoped-VMEM clamp) for the current TPU generation."""
    try:
        cap = int(pltpu.get_tpu_info().vmem_capacity_bytes)
    except Exception:
        cap = 64 << 20  # conservative default (v7x-sized VMEM)
    if cap >= (100 << 20):           # v5e / v6e: 128 MiB physical VMEM
        return 12 << 20, 64 << 20
    return 4 << 20, 40 << 20         # v7x: 64 MiB physical VMEM


def _compiler_params(semantics, need_bytes, vmem_clamp):
    limit = int(min(vmem_clamp, max(32 << 20, need_bytes)))
    return pltpu.CompilerParams(
        dimension_semantics=semantics, vmem_limit_bytes=limit)


def _pick_block_batch(n, per_sample_bytes, budget_bytes, min_steps=4):
    """Largest divisor of n within the byte budget, keeping >= min_steps grid steps."""
    bt = max(1, min(n, budget_bytes // max(per_sample_bytes, 1)))
    bt = min(bt, max(1, n // min(min_steps, n)))
    while n % bt:
        bt -= 1
    return bt


def _pick_hw_block(hw, c, itemsize, budget_bytes):
    """Largest 128-multiple divisor of hw whose (C, thw) tiles fit the budget."""
    best = None
    per_col = c * (2 * itemsize + 4)        # in + out + f32 temp, per HW column
    for t in range(128, hw + 1, 128):
        if hw % t == 0 and t * per_col <= budget_bytes:
            best = t
    return best


# --------------------------------------------------------------------------
# Kernels
# --------------------------------------------------------------------------
def _gn1_stats(x_f32):
    """Mean-subtracted GroupNorm(1) stats over the (channel, spatial) axes.

    x_f32: (Bt, C, S) f32.  Returns (d, inv) with d = x - mean (Bt, C, S) and
    inv = rsqrt(var + eps) (Bt, 1, 1); biased variance (PyTorch convention),
    computed from d to avoid E[x^2]-E[x]^2 catastrophic cancellation.
    """
    n = x_f32.shape[1] * x_f32.shape[2]
    mean = jnp.sum(jnp.sum(x_f32, axis=2, keepdims=True),
                   axis=1, keepdims=True) * (1.0 / n)
    d = x_f32 - mean
    var = jnp.sum(jnp.sum(d * d, axis=2, keepdims=True),
                  axis=1, keepdims=True) * (1.0 / n)
    return d, jax.lax.rsqrt(var + EPS)


def _gn1_kernel(x_ref, gamma_ref, beta_ref, o_ref):
    # x_ref/o_ref: (Bt, C, HW)    gamma_ref/beta_ref: (1, C, 1) f32
    x = x_ref[...]
    d, inv = _gn1_stats(x.astype(jnp.float32))
    scale = gamma_ref[...] * inv                                    # (Bt, C, 1)
    if x.dtype == jnp.float32:
        o_ref[...] = (d * scale + beta_ref[...]).astype(o_ref.dtype)
    else:
        # bf16 inputs: stats in f32 above, affine in the packed input dtype
        # (bf16 VALU on v6e/v7x halves the elementwise work of this chain).
        o_ref[...] = (d.astype(x.dtype) * scale.astype(x.dtype)
                      + beta_ref[...].astype(x.dtype)).astype(o_ref.dtype)


def _gn1_conv1x1_kernel(x_ref, gamma_ref, beta_ref, w_ref, o_ref):
    # x_ref: (1, C, HW)   gamma/beta: (1, C, 1) f32   w_ref: (Cout, C) bf16
    # o_ref: (1, Cout, HW)
    x = x_ref[...]
    d, inv = _gn1_stats(x.astype(jnp.float32))
    y = d * (gamma_ref[...] * inv) + beta_ref[...]                  # (1, C, HW)
    # Exactly one bf16 MXU matmul per grid step (f32 accumulation), no
    # per-sample unrolled loop: (Cout, C) @ (C, HW).
    # TODO(synk): for tiny C (< 8) the MXU runs at K/256 efficiency; a VPU
    # broadcast-MAC channel mix would be faster for such toy shapes.
    out = jnp.dot(w_ref[...], y[0].astype(jnp.bfloat16),
                  preferred_element_type=jnp.float32)               # (Cout, HW)
    o_ref[0] = out.astype(o_ref.dtype)


def _gn1_stats_kernel(n_elems, x_ref, gamma_ref, beta_ref,
                      scale_ref, shift_ref, s1_ref, s2_ref):
    # Pass 1 of the HW-tiled variant.  x_ref: (1, C, thw); s1/s2: (1, C, 1)
    # per-channel partial sums in VMEM scratch; outputs scale/shift (1, C, 1).
    j = pl.program_id(1)

    @pl.when(j == 0)
    def _():
        s1_ref[...] = jnp.zeros_like(s1_ref)
        s2_ref[...] = jnp.zeros_like(s2_ref)

    x = x_ref[...].astype(jnp.float32)
    s1_ref[...] += jnp.sum(x, axis=2, keepdims=True)
    s2_ref[...] += jnp.sum(x * x, axis=2, keepdims=True)

    @pl.when(j == pl.num_programs(1) - 1)
    def _():
        # TODO(synk): streaming stats use E[x^2]-E[x]^2 (f32 accumulation);
        # switch to Welford / an extra mean-subtracted pass if activations
        # are strongly non-centred.
        inv_n = 1.0 / n_elems
        mean = jnp.sum(s1_ref[...], axis=1, keepdims=True) * inv_n   # (1,1,1)
        ex2 = jnp.sum(s2_ref[...], axis=1, keepdims=True) * inv_n
        var = jnp.maximum(ex2 - mean * mean, 0.0)
        inv = jax.lax.rsqrt(var + EPS)
        scale = gamma_ref[...] * inv                                 # (1, C, 1)
        scale_ref[...] = scale
        shift_ref[...] = beta_ref[...] - mean * scale


def _gn1_apply_kernel(x_ref, scale_ref, shift_ref, o_ref):
    # Pass 2 of the HW-tiled variant.  x_ref/o_ref: (1, C, thw).
    x = x_ref[...]
    if x.dtype == jnp.float32:
        o_ref[...] = (x * scale_ref[...] + shift_ref[...]).astype(o_ref.dtype)
    else:
        o_ref[...] = (x * scale_ref[...].astype(x.dtype)
                      + shift_ref[...].astype(x.dtype)).astype(o_ref.dtype)


# --------------------------------------------------------------------------
# Wrappers
# --------------------------------------------------------------------------
def groupnorm1(x_nchw, gamma, beta, *, block_batch=None, hw_block=None):
    """GroupNorm(num_groups=1, num_channels=C) over an NCHW input (Pallas)."""
    N, C, H, W = x_nchw.shape
    HW = H * W
    itemsize = jnp.dtype(x_nchw.dtype).itemsize
    tile_budget, vmem_clamp = _vmem_caps()
    # Whole-sample residency cost: in + out tiles plus the in-kernel f32 temps.
    per_sample = C * HW * (2 * itemsize + 3 * 4)
    if hw_block is not None or per_sample > tile_budget:
        return _groupnorm1_hw_tiled(x_nchw, gamma, beta, hw_block=hw_block,
                                    tile_budget=tile_budget, vmem_clamp=vmem_clamp)

    bt = block_batch or _pick_block_batch(N, per_sample, tile_budget)
    x = x_nchw.reshape(N, C, HW)
    gamma3 = gamma.reshape(1, C, 1).astype(jnp.float32)
    beta3 = beta.reshape(1, C, 1).astype(jnp.float32)
    # Double-buffered in/out tiles + in-kernel f32 temporaries + headroom.
    need = 4 * bt * C * HW * itemsize + 3 * bt * C * HW * 4 + (2 << 20)
    # TODO(synk): when HW % 128 != 0 the (C, HW) stores are lane-masked; pad
    # HW to a multiple of 128 (with masked stats) for store-bound shapes.
    out = pl.pallas_call(
        _gn1_kernel,
        out_shape=jax.ShapeDtypeStruct((N, C, HW), x.dtype),
        grid_spec=pltpu.PrefetchScalarGridSpec(
            num_scalar_prefetch=0,
            grid=(N // bt,),
            in_specs=[
                pl.BlockSpec((bt, C, HW), lambda i: (i, 0, 0)),
                pl.BlockSpec((1, C, 1), lambda i: (0, 0, 0)),
                pl.BlockSpec((1, C, 1), lambda i: (0, 0, 0)),
            ],
            out_specs=pl.BlockSpec((bt, C, HW), lambda i: (i, 0, 0)),
        ),
        compiler_params=_compiler_params(("parallel",), need, vmem_clamp),
    )(x, gamma3, beta3)
    return out.reshape(N, C, H, W)


def _groupnorm1_hw_tiled(x_nchw, gamma, beta, *, hw_block, tile_budget, vmem_clamp):
    """Two-pass GroupNorm(1) for samples too large to keep resident in VMEM.

    Pass 1 accumulates per-channel sum / sum-of-squares over 128-aligned HW
    tiles into VMEM scratch and emits per-(sample, channel) scale/shift;
    pass 2 applies the affine.  One extra HBM read of x, but never exceeds
    the tile budget (v7x's 64 MiB VMEM is the binding case).
    """
    N, C, H, W = x_nchw.shape
    HW = H * W
    itemsize = jnp.dtype(x_nchw.dtype).itemsize
    thw = hw_block or _pick_hw_block(HW, C, itemsize, tile_budget)
    if thw is None:
        thw = 128 if HW % 128 == 0 else HW
    assert HW % thw == 0, "hw_block must divide H*W"
    n_hw = HW // thw

    x = x_nchw.reshape(N, C, HW)
    gamma3 = gamma.reshape(1, C, 1).astype(jnp.float32)
    beta3 = beta.reshape(1, C, 1).astype(jnp.float32)

    stat_need = 2 * C * thw * itemsize + 2 * C * thw * 4 + (2 << 20)
    scale, shift = pl.pallas_call(
        functools.partial(_gn1_stats_kernel, float(C * HW)),
        out_shape=(jax.ShapeDtypeStruct((N, C, 1), jnp.float32),
                   jax.ShapeDtypeStruct((N, C, 1), jnp.float32)),
        grid_spec=pltpu.PrefetchScalarGridSpec(
            num_scalar_prefetch=0,
            grid=(N, n_hw),
            in_specs=[
                pl.BlockSpec((1, C, thw), lambda i, j: (i, 0, j)),
                pl.BlockSpec((1, C, 1), lambda i, j: (0, 0, 0)),
                pl.BlockSpec((1, C, 1), lambda i, j: (0, 0, 0)),
            ],
            out_specs=[
                pl.BlockSpec((1, C, 1), lambda i, j: (i, 0, 0)),
                pl.BlockSpec((1, C, 1), lambda i, j: (i, 0, 0)),
            ],
            scratch_shapes=[pltpu.VMEM((1, C, 1), jnp.float32),
                            pltpu.VMEM((1, C, 1), jnp.float32)],
        ),
        compiler_params=_compiler_params(("parallel", "arbitrary"),
                                         stat_need, vmem_clamp),
    )(x, gamma3, beta3)

    apply_need = 4 * C * thw * itemsize + C * thw * 4 + (2 << 20)
    out = pl.pallas_call(
        _gn1_apply_kernel,
        out_shape=jax.ShapeDtypeStruct((N, C, HW), x.dtype),
        grid_spec=pltpu.PrefetchScalarGridSpec(
            num_scalar_prefetch=0,
            grid=(N, n_hw),
            in_specs=[
                pl.BlockSpec((1, C, thw), lambda i, j: (i, 0, j)),
                pl.BlockSpec((1, C, 1), lambda i, j: (i, 0, 0)),
                pl.BlockSpec((1, C, 1), lambda i, j: (i, 0, 0)),
            ],
            out_specs=pl.BlockSpec((1, C, thw), lambda i, j: (i, 0, j)),
        ),
        compiler_params=_compiler_params(("parallel", "parallel"),
                                         apply_need, vmem_clamp),
    )(x, scale, shift)
    return out.reshape(N, C, H, W)


def groupnorm1_conv1x1(x_nchw, gamma, beta, w):
    """Fused GroupNorm(1, C) + 1x1 conv (channel mixing by w[(Cout, C)])."""
    N, C, H, W = x_nchw.shape
    HW = H * W
    w2 = jnp.asarray(w).reshape(-1, C)
    Cout = w2.shape[0]
    itemsize = jnp.dtype(x_nchw.dtype).itemsize
    tile_budget, vmem_clamp = _vmem_caps()
    # Double-buffered in/out tiles + f32 temporaries (x_f32, d, y, matmul acc).
    need = (2 * (C + Cout) * HW * itemsize + (3 * C + Cout) * HW * 4
            + 2 * Cout * C * 2 + (2 << 20))
    if need > vmem_clamp:
        # Sample too large for the fused kernel: (possibly HW-tiled)
        # GroupNorm kernel followed by a plain-JAX channel mix.
        y = groupnorm1(x_nchw, gamma, beta)
        return jnp.einsum("oc,nchw->nohw",
                          w2.astype(jnp.float32), y).astype(y.dtype)

    x = x_nchw.reshape(N, C, HW)
    gamma3 = gamma.reshape(1, C, 1).astype(jnp.float32)
    beta3 = beta.reshape(1, C, 1).astype(jnp.float32)
    w_bf16 = w2.astype(jnp.bfloat16)   # cast once; bf16 operands hit MXU peak.
    out = pl.pallas_call(
        _gn1_conv1x1_kernel,
        out_shape=jax.ShapeDtypeStruct((N, Cout, HW), x.dtype),
        grid_spec=pltpu.PrefetchScalarGridSpec(
            num_scalar_prefetch=0,
            grid=(N,),
            in_specs=[
                pl.BlockSpec((1, C, HW), lambda i: (i, 0, 0)),
                pl.BlockSpec((1, C, 1), lambda i: (0, 0, 0)),
                pl.BlockSpec((1, C, 1), lambda i: (0, 0, 0)),
                pl.BlockSpec((Cout, C), lambda i: (0, 0)),
            ],
            out_specs=pl.BlockSpec((1, Cout, HW), lambda i: (i, 0, 0)),
        ),
        compiler_params=_compiler_params(("parallel",), need, vmem_clamp),
    )(x, gamma3, beta3, w_bf16)
    return out.reshape(N, Cout, H, W)


# --------------------------------------------------------------------------
# Module equivalents
# --------------------------------------------------------------------------
class Conv1x1:
    """1x1 conv (channel-mixing matmul); fusable into the PreNorm kernel."""

    def __init__(self, dim_in, dim_out, key):
        self.weight = jax.random.normal(key, (dim_out, dim_in), jnp.float32) * 0.1

    def __call__(self, y):  # plain-JAX fallback, y: (N, C, H, W)
        return jnp.einsum("oc,nchw->nohw", self.weight, y)


class PreNorm:
    """JAX/Pallas equivalent of the PyTorch PreNorm module."""

    def __init__(self, dim, fn, key):
        self.fn = fn
        # nn.GroupNorm default init is weight=1, bias=0; deterministic random
        # affine params exercise the affine path non-trivially.
        kg, kb = jax.random.split(key)
        self.gamma = jax.random.normal(kg, (dim,), jnp.float32) * 0.1 + 1.0
        self.beta = jax.random.normal(kb, (dim,), jnp.float32) * 0.1

    def __call__(self, x):
        if isinstance(self.fn, Conv1x1):
            # Fused path: GroupNorm + 1x1 conv in one kernel (no HBM round
            # trip of the normalized tensor).
            return groupnorm1_conv1x1(x, self.gamma, self.beta, self.fn.weight)
        # Generic path: arbitrary user `fn` runs as plain JAX afterwards.
        return self.fn(groupnorm1(x, self.gamma, self.beta))


if __name__ == "__main__":
    key = jax.random.PRNGKey(0)
    k_x, k_w, k_mod = jax.random.split(key, 3)

    N, C, H, W = 2, 4, 16, 16
    x = jax.random.normal(k_x, (N, C, H, W), jnp.float32)

    conv = Conv1x1(C, C, k_w)
    model = PreNorm(C, conv, k_mod)            # fused GroupNorm + 1x1-conv path
    out = jax.block_until_ready(model(x))

    # ---------------- plain-JAX reference ----------------
    xf = x.reshape(N, -1)
    mean = xf.mean(axis=1, keepdims=True)
    var = ((xf - mean) ** 2).mean(axis=1, keepdims=True)
    xn = ((xf - mean) / jnp.sqrt(var + EPS)).reshape(N, C, H, W)
    xn = xn * model.gamma.reshape(1, C, 1, 1) + model.beta.reshape(1, C, 1, 1)

    # Exact elementwise f32 reference for the 1x1 conv.
    ref_fused = jnp.sum(conv.weight[None, :, :, None, None] * xn[:, None], axis=2)
    assert out.shape == (N, C, H, W)
    # The fused matmul runs with bf16 operands on the MXU (f32 accumulate).
    assert jnp.allclose(out, ref_fused, atol=1e-2, rtol=1e-2)

    # Generic path: arbitrary `fn` (gelu) applied after the GroupNorm kernel.
    model_generic = PreNorm(C, jax.nn.gelu, k_mod)
    out2 = jax.block_until_ready(model_generic(x))
    ref2 = jax.nn.gelu(xn)
    assert out2.shape == (N, C, H, W)
    assert jnp.allclose(out2, ref2, atol=1e-4, rtol=1e-4)

    # Two-pass HW-tiled fallback, forced at a small tile to exercise it here.
    out3 = jax.block_until_ready(groupnorm1(x, model.gamma, model.beta, hw_block=128))
    assert jnp.allclose(out3, xn, atol=1e-3, rtol=1e-3)

    # bf16 input path: stats in f32, affine in bf16.
    out4 = jax.block_until_ready(
        groupnorm1(x.astype(jnp.bfloat16), model.gamma, model.beta))
    assert jnp.allclose(out4.astype(jnp.float32), xn, atol=1e-1, rtol=5e-2)

    print("KERNEL_OK")
</pallas_src>

<mosaic_0001>
module attributes {stable_mosaic.version = 11 : i64} {
  func.func @_gn1_conv1x1_kernel(%arg0: i32, %arg1: memref<1x4x256xf32, #tpu.memory_space<vmem>>, %arg2: memref<1x4x1xf32, #tpu.memory_space<vmem>>, %arg3: memref<1x4x1xf32, #tpu.memory_space<vmem>>, %arg4: memref<4x4xbf16, #tpu.memory_space<vmem>>, %arg5: memref<1x4x256xf32, #tpu.memory_space<vmem>>) attributes {dimension_semantics = [#tpu.dimension_semantics<parallel>], iteration_bounds = array<i64: 2>, scalar_prefetch = 0 : i64, scratch_operands = 0 : i64, tpu.core_type = #tpu.core_type<tc>, window_params = [{transform_indices = @transform_0, window_bounds = array<i64: 1, 4, 256>}, {pipeline_mode = #tpu.pipeline_mode<synchronous>, transform_indices = @transform_1, window_bounds = array<i64: 1, 4, 1>}, {pipeline_mode = #tpu.pipeline_mode<synchronous>, transform_indices = @transform_2, window_bounds = array<i64: 1, 4, 1>}, {pipeline_mode = #tpu.pipeline_mode<synchronous>, transform_indices = @transform_3, window_bounds = array<i64: 4, 4>}, {transform_indices = @transform_4, window_bounds = array<i64: 1, 4, 256>}]} {
    %c0 = arith.constant 0 : index
    %c0_0 = arith.constant 0 : index
    %c0_1 = arith.constant 0 : index
    %0 = vector.load %arg1[%c0, %c0_0, %c0_1] : memref<1x4x256xf32, #tpu.memory_space<vmem>>, vector<1x4x256xf32>
    %cst = arith.constant dense<0.000000e+00> : vector<1x4xf32>
    %1 = vector.multi_reduction <add>, %0, %cst [2] : vector<1x4x256xf32> to vector<1x4xf32>
    %2 = vector.shape_cast %1 : vector<1x4xf32> to vector<1x4x1xf32>
    %cst_2 = arith.constant dense<0.000000e+00> : vector<1x1xf32>
    %3 = vector.multi_reduction <add>, %2, %cst_2 [1] : vector<1x4x1xf32> to vector<1x1xf32>
    %4 = vector.shape_cast %3 : vector<1x1xf32> to vector<1x1x1xf32>
    %cst_3 = arith.constant 9.765625E-4 : f32
    %5 = vector.broadcast %cst_3 : f32 to vector<1x1x1xf32>
    %6 = arith.mulf %4, %5 : vector<1x1x1xf32>
    %7 = vector.broadcast %6 : vector<1x1x1xf32> to vector<1x4x256xf32>
    %8 = arith.subf %0, %7 : vector<1x4x256xf32>
    %9 = arith.mulf %8, %8 : vector<1x4x256xf32>
    %cst_4 = arith.constant dense<0.000000e+00> : vector<1x4xf32>
    %10 = vector.multi_reduction <add>, %9, %cst_4 [2] : vector<1x4x256xf32> to vector<1x4xf32>
    %11 = vector.shape_cast %10 : vector<1x4xf32> to vector<1x4x1xf32>
    %cst_5 = arith.constant dense<0.000000e+00> : vector<1x1xf32>
    %12 = vector.multi_reduction <add>, %11, %cst_5 [1] : vector<1x4x1xf32> to vector<1x1xf32>
    %13 = vector.shape_cast %12 : vector<1x1xf32> to vector<1x1x1xf32>
    %cst_6 = arith.constant 9.765625E-4 : f32
    %14 = vector.broadcast %cst_6 : f32 to vector<1x1x1xf32>
    %15 = arith.mulf %13, %14 : vector<1x1x1xf32>
    %cst_7 = arith.constant 9.99999974E-6 : f32
    %16 = vector.broadcast %cst_7 : f32 to vector<1x1x1xf32>
    %17 = arith.addf %15, %16 : vector<1x1x1xf32>
    %18 = math.rsqrt %17 : vector<1x1x1xf32>
    %c0_8 = arith.constant 0 : index
    %c0_9 = arith.constant 0 : index
    %c0_10 = arith.constant 0 : index
    %19 = vector.load %arg2[%c0_8, %c0_9, %c0_10] : memref<1x4x1xf32, #tpu.memory_space<vmem>>, vector<1x4x1xf32>
    %20 = vector.broadcast %18 : vector<1x1x1xf32> to vector<1x4x1xf32>
    %21 = arith.mulf %19, %20 : vector<1x4x1xf32>
    %22 = vector.broadcast %21 : vector<1x4x1xf32> to vector<1x4x256xf32>
    %23 = arith.mulf %8, %22 : vector<1x4x256xf32>
    %c0_11 = arith.constant 0 : index
    %c0_12 = arith.constant 0 : index
    %c0_13 = arith.constant 0 : index
    %24 = vector.load %arg3[%c0_11, %c0_12, %c0_13] : memref<1x4x1xf32, #tpu.memory_space<vmem>>, vector<1x4x1xf32>
    %25 = vector.broadcast %24 : vector<1x4x1xf32> to vector<1x4x256xf32>
    %26 = arith.addf %23, %25 : vector<1x4x256xf32>
    %c0_14 = arith.constant 0 : index
    %c0_15 = arith.constant 0 : index
    %27 = vector.load %arg4[%c0_14, %c0_15] : memref<4x4xbf16, #tpu.memory_space<vmem>>, vector<4x4xbf16>
    %28 = vector.shape_cast %26 : vector<1x4x256xf32> to vector<4x256xf32>
    %29 = arith.truncf %28 : vector<4x256xf32> to vector<4x256xbf16>
    %cst_16 = arith.constant dense<0.000000e+00> : vector<4x256xf32>
    %30 = tpu.matmul %27, %29, %cst_16 {dimension_numbers = #tpu.dot_dimension_numbers<[1], [0], [0], [1], [0, 0, 1, 1], [], []>} : vector<4x4xbf16>, vector<4x256xbf16>, vector<4x256xf32> -> vector<4x256xf32>
    %c0_17 = arith.constant 0 : index
    %c0_18 = arith.constant 0 : index
    %c0_19 = arith.constant 0 : index
    %31 = vector.load %arg5[%c0_17, %c0_18, %c0_19] : memref<1x4x256xf32, #tpu.memory_space<vmem>>, vector<1x4x256xf32>
    %32 = vector.shape_cast %31 : vector<1x4x256xf32> to vector<4x256xf32>
    %33 = vector.shape_cast %30 : vector<4x256xf32> to vector<1x4x256xf32>
    tpu.vector_store %arg5[%c0_17, %c0_18, %c0_19], %33 {strides = array<i32>} : memref<1x4x256xf32, #tpu.memory_space<vmem>>, vector<1x4x256xf32>,
    return
  }
  func.func @transform_0(%arg0: i32) -> (i32, i32, i32) {
    %c0_i32 = arith.constant 0 : i32
    %c0_i32_0 = arith.constant 0 : i32
    %c0_i32_1 = arith.constant 0 : i32
    return %arg0, %c0_i32, %c0_i32_0 : i32, i32, i32
  }
  func.func @transform_1(%arg0: i32) -> (i32, i32, i32) {
    %c0_i32 = arith.constant 0 : i32
    %c0_i32_0 = arith.constant 0 : i32
    %c0_i32_1 = arith.constant 0 : i32
    %c0_i32_2 = arith.constant 0 : i32
    return %c0_i32, %c0_i32_0, %c0_i32_1 : i32, i32, i32
  }
  func.func @transform_2(%arg0: i32) -> (i32, i32, i32) {
    %c0_i32 = arith.constant 0 : i32
    %c0_i32_0 = arith.constant 0 : i32
    %c0_i32_1 = arith.constant 0 : i32
    %c0_i32_2 = arith.constant 0 : i32
    return %c0_i32, %c0_i32_0, %c0_i32_1 : i32, i32, i32
  }
  func.func @transform_3(%arg0: i32) -> (i32, i32) {
    %c0_i32 = arith.constant 0 : i32
    %c0_i32_0 = arith.constant 0 : i32
    %c0_i32_1 = arith.constant 0 : i32
    return %c0_i32, %c0_i32_0 : i32, i32
  }
  func.func @transform_4(%arg0: i32) -> (i32, i32, i32) {
    %c0_i32 = arith.constant 0 : i32
    %c0_i32_0 = arith.constant 0 : i32
    %c0_i32_1 = arith.constant 0 : i32
    return %arg0, %c0_i32, %c0_i32_0 : i32, i32, i32
  }
}

</mosaic_0001>

<bundles_post_ra>
// kernel: tpu_custom_call.1
= control target key start
LH: loop header
LB: loop body
LE: loop exit
PB: predicated region body
PF: predicated region fallthrough
CT: control target
= control target key end

     0   :  { %9 = vsyncpa [#allocation3], 0  ;;  %s808_s0 = inlined_call_operand.hbm [shape: f32[2,4,256], index: 0, kind: input, shape index: {}]   ;;  %s809_s1 = inlined_call_operand.vmem [shape: f32[1,4,1], index: 1, kind: input, shape index: {}]   ;;  %s810_s2 = inlined_call_operand.vmem [shape: f32[1,4,1], index: 2, kind: input, shape index: {}]   ;;  %s811_s3 = inlined_call_operand.vmem [shape: bf16[4,4], index: 3, kind: input, shape index: {}]   ;;  %s812_s4 = inlined_call_operand.hbm [shape: f32[2,4,256], index: 4, kind: output, shape index: {}]  }
   0x1   :  { %11 = vsyncpa [#allocation3 + $0x1], 0 }
   0x2   :  { %12 = vsyncpa [#allocation4], 0 }
   0x3   :  { %14 = vsyncpa [#allocation4 + $0x1], 0  ;;  %s628_s15 = smov 0   ;;  %s630_s16 = smov 0  }
   0x4   :  { %s632_s17 = smov 0   ;;  %s634_s18 = smov 0  }
   0x5 LB: > { %s649_s19 = sadd.s32 4294967295, %s597_s18   ;;  %s430_s20 = sadd.s32 4294967294, %s597_s18   ;;  %s597_s18 = sphi %s634_s18, %s827_s18   ;;  %s593_s17 = sphi %s632_s17, %s826_s17   ;;  %s589_s16 = sphi %s630_s16, %s825_s16   ;;  %s585_s15 = sphi %s628_s15, %s824_s15  }
   0x6   : > { %s653_s21 = sadd.s32 1, %s597_s18   ;;  %s27_s22 = sadd.s32 1, %s593_s17 }
   0x7   : > { %s24_s23 = ssub.s32 %s597_s18, %s653_s21  ;;  %p34_p0 = scmp.ne.s32.totalorder %s593_s17, %s589_s16 }
   0x8   : > { %p25_p1 = scmp.eq.s32.totalorder %s24_s23, 0  ;;  %p35_p2 = scmp.eq.s32.totalorder %s597_s18, 0 }
   0x9   : > { %p40_p3 = scmp.ne.s32.totalorder %s589_s16, %s585_s15  ;;  %p41_p4 = scmp.eq.s32.totalorder %s649_s19, 0 }
   0xa   : > { %s665_s24 = scalar_select %p25_p1, %s593_s17, %s27_s22  }
   0xb   : > { %p667_p5 = por %p35_p2, %p34_p0  ;;  %p671_p6 = por %p41_p4, %p40_p3 }
   0xc   : > { %p127_p7 = scmp.eq.s32.totalorder %s649_s19, 1  ;;  %p133_p8 = scmp.eq.s32.totalorder %s430_s20, 1 }
   0xd   : > { %p460_p10 = scmp.lt.s32.totalorder %s597_s18, 2  ;;  %s162_s29 = sand.u32 1, %s593_s17  }
   0xe   : > { %p678_p11 = por %p127_p7, %p34_p0  ;;  %p682_p12 = por %p133_p8, %p40_p3 }
   0xf   : > { %s446_s30 = sshll.u32 %s597_s18, 7  ;;  %s433_s5 = sshll.u32 %s162_s29, 3 }
  0x10   : > { %s816_s27 = scalar_select %p678_p11, 1, 0 }
  0x11   : > { %s817_s28 = scalar_select %p682_p12, 1, 0 }
  0x12   : > { %s691_s8 = scalar_lea.hbm %s808_s0, %s446_s30  ;;  %s166_s9 = scalar_lea.vmem [#allocation2], %s433_s5 }
  0x13   : > { %s174_s10 = sshll.u32 %s166_s9, 4  ;;  %p695_p13 = pnand %p460_p10, %p667_p5  ;;  %s699_s10 = int_to_ptr.vmem [resolvable:$true] %s174_s10 }
  0x14   : > { %s163_s12 = scalar_lea.sflag [#allocation3], %s162_s29  ;;  %s501_s13 = scalar_lea.hbm %s691_s8, 128 }
  0x15   : > { %p502_p2 = scmp.ne.s32.totalorder %s691_s8, %s501_s13  ;;  %p503_p3 = pneg %p695_p13 }
  0x16   : > { %s506_s22 = scalar_lea.hbm %s808_s0, 256  ;;  %p507_p5 = scmp.lt.u32.totalorder %s691_s8, %s808_s0 }
  0x17   : > { %p504_p4 = pnand %p503_p3, %p502_p2  ;;  %p508_p8 = scmp.lt.u32.totalorder %s506_s22, %s501_s13 }
  0x18   : > { %p510_p9 = scmp.lt.u32.totalorder %s501_s13, %s691_s8 }
  0x19   : > { %p505_p7 = pneg %p504_p4  ;;  %p509_p10 = por %p508_p8, %p507_p5 }
  0x1b   : > { %p511_p0 = por %p510_p9, %p509_p10 }
  0x1d   : > { %p512_p1 = pnand %p511_p0, %p505_p7 }
  0x1f   : > { %515 = shalt.err (!%p512_p1)
}
  0x20   : > { %s516_s29 = scalar_lea.vmem %s699_s10, 128  ;;  %s599_s30 = smov [#allocation2]  }
  0x21   : > { %p517_p2 = scmp.ne.s32.totalorder %s699_s10, %s516_s29  ;;  %s521_s5 = sshll.u32 %s599_s30, 4  ;;  %s522_s5 = int_to_ptr.vmem [resolvable:$false] %s521_s5 }
  0x22   : > { %s523_s6 = scalar_lea.vmem %s522_s5, 256  ;;  %p524_p11 = scmp.lt.s32.totalorder %s699_s10, %s522_s5 }
  0x23   : > { %p519_p4 = pnand %p517_p2, %p503_p3  ;;  %p525_p5 = scmp.lt.s32.totalorder %s523_s6, %s516_s29 }
  0x25   : > { %p520_p12 = pneg %p519_p4  ;;  %p526_p8 = por %p525_p5, %p524_p11 }
  0x27   : > { %p527_p9 = pnand %p526_p8, %p520_p12 }
  0x29   : > { %530 = shalt.err (!%p527_p9)
}
  0x2a   : > { %455 = dma.hbm_to_vmem [thread:$0]  (!%p695_p13), %s691_s8, 128, %s699_s10, %s163_s12  }
  0x2b   : > { %p819_p0 = scmp.lt.s32.totalorder %s597_s18, 3  ;;  %p820_p1 = scmp.ge.s32.totalorder %s597_s18, 1 }
  0x2d   : > { %p180_p3 = pnand %p820_p1, %p819_p0 }
  0x2e   : > { %s733_s7 = sand.u32 (!%p180_p3), 1, %s589_s16  }
  0x2f   : > { %183 = sbr.rel (%p180_p3) target bundleno = 772 (0x304), region = 36  ;;  %s437_s9 = sshll.u32 (!%p180_p3), %s733_s7, 3 }
  0x30   : > { %s186_s13 = scalar_lea.sflag (!%p180_p3), [#allocation3], %s733_s7  ;;  %s189_s11 = scalar_lea.vmem (!%p180_p3), [#allocation2], %s437_s9 }
  0x36   : > { %576 = dma.done.wait (%p671_p6), %s186_s13, 128  }
  0x37   : > { %578 = vsyncadd (%p671_p6), %s186_s13, 4294967168  ;;  %vm219_vm0 = vcmask 1043456   ;;  %v215_v0 = vld [vmem:[%s189_s11] sm:$0xff]  ;;  %v600_v20 = vmov 0   ;;  %v601_v35 = vmov 839922192   ;;  %v262_v37 = vlaneseq }
  0x38   : > { %v217_v1 = vcombine.high %v215_v0, %v215_v0  ;;  %v220_v2 = vsel %vm219_vm0, %v215_v0, 0.0  ;;  %496 = vset.pattern.permute.xlu1 %v600_v20  ;;  %331 = vmatprep.mubr.bf16.mxu0 %v600_v20  ;;  %v253_v31 = vld [vmem:[%s809_s1] sm:$0xf]  ;;  %v260_v36 = vunpack.c.l.s4 %v601_v35  ;;  %vm292_vm1 = vcmask 1041408   ;;  %s447_s22 = sshll.u32 %s649_s19, 7  ;;  %s213_s23 = scalar_lea.vmem [#allocation5], %s437_s9 }
  0x39   : > { %497 = vset.pattern.permute.xlu0 %v600_v20  ;;  %v268_v34 = vld [vmem:[%s810_s2] sm:$0xf]  ;;  %v263_v39 = vshrl.u32 %v262_v37, 7  ;;  %vm288_vm2 = vcmask 31744   ;;  %s360_s25 = sshll.u32 %s213_s23, 4  ;;  %s764_s5 = scalar_lea.hbm %s812_s4, %s447_s22  ;;  %s766_s25 = int_to_ptr.vmem [resolvable:$true] %s360_s25 }
  0x3a   : > { %v221_v3 = vsel %vm219_vm0, %v217_v1, 0.0  ;;  %v261_v38 = vunpack.c.0.s8 %v260_v36  ;;  %v282_v51 = vld [vmem:[%s811_s3] sm:$0x3]  ;;  %s346_s19 = scalar_lea.sflag [#allocation4], %s733_s7  ;;  %s531_s6 = scalar_lea.vmem %s766_s25, 128 }
  0x3b   : > { %v222_v4 = vadd.f32 %v221_v3, %v220_v2  ;;  %p532_p6 = scmp.ne.s32.totalorder %s766_s25, %s531_s6  ;;  %p821_p11 = scmp.ne.s32.totalorder %s816_s27, 0 }
  0x3c   : > { %v264_v40 = vsub.s32 %v261_v38, %v263_v39  ;;  %s602_s9 = smov [#allocation5]  }
  0x3d   : > { %223 = vadd.xlane.f32.xlu0 %v222_v4  ;;  %p533_p12 = pnand %p532_p6, %p821_p11  ;;  %s535_s13 = sshll.u32 %s602_s9, 4  ;;  %s536_s13 = int_to_ptr.vmem [resolvable:$false] %s535_s13 }
  0x3e   : > { %s537_s11 = scalar_lea.vmem %s536_s13, 256  ;;  %p538_p7 = scmp.lt.s32.totalorder %s766_s25, %s536_s13 }
  0x3f   : > { %p534_p13 = pneg %p533_p12  ;;  %p539_p10 = scmp.lt.s32.totalorder %s537_s11, %s531_s6 }
  0x41   : > { %p540_p2 = por %p539_p10, %p538_p7 }
  0x43   : > { %p541_p4 = pnand %p540_p2, %p534_p13 }
  0xca   : > { %v224_v5 = vpop.xlane.xlu0 %223 }
  0xcb   : > { %v225_v6 = vsel %vm219_vm0, %v224_v5, 0.0 }
  0xcc   : > { %v226_v7 = vrot.slane %v225_v6, 4 }
  0xce   : > { %v227_v8 = vadd.f32 %v226_v7, %v225_v6 }
  0xd0   : > { %v228_v9 = vrot.slane %v227_v8, 2 }
  0xd2   : > { %v229_v10 = vadd.f32 %v228_v9, %v227_v8 }
  0xd4   : > { %v230_v11 = vrot.slane %v229_v10, 1 }
  0xd6   : > { %v231_v12 = vadd.f32 %v230_v11, %v229_v10 }
  0xd8   : > { %v232_v13 = vmul.f32 0.0009765625, %v231_v12 }
  0xda   : > { %v233_v14 = vsub.f32 %v215_v0, %v232_v13 }
  0xdc   : > { %v234_v15 = vmul.f32 %v233_v14, %v233_v14 }
  0xde   : > { %v236_v16 = vcombine.high %v234_v15, %v234_v15  ;;  %v238_v17 = vsel %vm219_vm0, %v234_v15, 0.0 }
  0xe0   : > { %v239_v18 = vsel %vm219_vm0, %v236_v16, 0.0 }
  0xe1   : > { %v240_v19 = vadd.f32 %v239_v18, %v238_v17 }
  0xe3   : > { %241 = vadd.xlane.f32.xlu0 %v240_v19 }
 0x170   : > { %v242_v21 = vpop.xlane.xlu0 %241 }
 0x171   : > { %v243_v22 = vsel %vm219_vm0, %v242_v21, 0.0 }
 0x172   : > { %v244_v23 = vrot.slane %v243_v22, 4 }
 0x174   : > { %v245_v24 = vadd.f32 %v244_v23, %v243_v22 }
 0x176   : > { %v246_v25 = vrot.slane %v245_v24, 2 }
 0x178   : > { %v247_v26 = vadd.f32 %v246_v25, %v245_v24 }
 0x17a   : > { %v248_v27 = vrot.slane %v247_v26, 1 }
 0x17c   : > { %v249_v28 = vadd.f32 %v248_v27, %v247_v26 }
 0x17e   : > { %v250_v29 = vmul.f32 0.0009765625, %v249_v28 }
 0x180   : > { %v251_v30 = vadd.f32 1e-05, %v250_v29 }
 0x182   : > { %499 = vrsqrt.f32 %v251_v30 }
 0x18c   : > { %v500_v32 = vpop.eup %499 }
 0x18d   : > { %v254_v33 = vmul.f32 %v500_v32, %v253_v31 }
 0x18f   : > { %257 = vperm.xlu1 %496, %v254_v33  }
 0x193   : > { %271 = vperm.xlu1 %496, %v268_v34  }
 0x20e   : > { %v258_v41 = vpop.permute.xlu1 %257 }
 0x20f   : > { %v265_v42 = vrot.slane %v258_v41, %v264_v40 }
 0x211   : > { %v267_v44 = vmul.f32 %v265_v42, %v233_v14 }
 0x212   : > { %v272_v43 = vpop.permute.xlu1 %271 }
 0x213   : > { %v279_v45 = vrot.slane %v272_v43, %v264_v40 }
 0x215   : > { %v281_v46 = vadd.f32 %v279_v45, %v267_v44 }
 0x217   : > { %v284_v47 = vcombine.high %v281_v46, %v281_v46  ;;  %v286_v48 = vpack.c.bf16 %v281_v46, %v281_v46 }
 0x219   : > { %v287_v49 = vpack.c.bf16 %v284_v47, %v284_v47  ;;  %v294_v50 = vsel %vm292_vm1, %v286_v48, 0 }
 0x21b   : > { %439 = vmatprep.subr.msk.bf16.mxu0 %vm292_vm1, %v287_v49 }
 0x21c   : > { %300 = vmatpush1.bf16.msra.mxu0 %v294_v50 }
 0x21f   : > { %440 = vmatmul.mubr.msk.bf16.vlgmr.msra.gmra.mrb[0].mxu0 %vm288_vm2, %v282_v51 }
 0x2f2   : > { %v333_v52 = vpop.f32.mrb[0].mxu0 }
 0x2f3   : > { %v335_v53 = vpop.f32.mrb[1].mxu0 }
 0x2f4   : > { %v342_v54 = vcombine.low %v333_v52, %v335_v53  ;;  %v337_v55 = vpop.f32.mrb[2].mxu0 }
 0x2f5   : > { %v338_v56 = vpop.f32.mrb[3].mxu0 }
 0x2f6   : > { %344 = vst [vmem:[%s213_s23] sm:$0xff] %v342_v54 }
 0x2f7   : > { %544 = shalt.err (!%p541_p4)
}
 0x2f8   : > { %s545_s7 = scalar_lea.hbm %s764_s5, 128  ;;  %s549_s10 = scalar_lea.hbm %s812_s4, 256 }
 0x2f9   : > { %p546_p5 = scmp.ne.s32.totalorder %s764_s5, %s545_s7  ;;  %p550_p0 = scmp.lt.u32.totalorder %s764_s5, %s812_s4 }
 0x2fa   : > { %p551_p1 = scmp.lt.u32.totalorder %s549_s10, %s545_s7  ;;  %p553_p6 = scmp.lt.u32.totalorder %s545_s7, %s764_s5 }
 0x2fb   : > { %p547_p8 = pnand %p546_p5, %p821_p11 }
 0x2fc   : > { %p552_p3 = por %p551_p1, %p550_p0 }
 0x2fd   : > { %p548_p9 = pneg %p547_p8 }
 0x2fe   : > { %p554_p12 = por %p553_p6, %p552_p3 }
 0x300   : > { %p555_p13 = pnand %p554_p12, %p548_p9 }
 0x302   : > { %558 = shalt.err (!%p555_p13)
}
 0x303   : > { %450 = dma.vmem_to_hbm [thread:$0]  (%p821_p11), %s766_s25, 128, %s764_s5, %s346_s19  }
 0x304 PF: > { %s372_s20 = sand.u32 1, %s585_s15   ;;  %p822_p7 = scmp.ne.s32.totalorder %s817_s28, 0 }
 0x305   : > { %p823_p10 = scmp.ge.s32.totalorder %s597_s18, 2  ;;  %s373_s22 = scalar_lea.sflag [#allocation4], %s372_s20 }
 0x307   : > { %p457_p2 = pnand %p823_p10, %p822_p7 }
 0x309   : > { %580 = dma.done.wait (!%p457_p2), %s373_s22, 128  }
 0x30a   : > { %582 = vsyncadd (!%p457_p2), %s373_s22, 4294967168  ;;  %p17_p4 = scmp.ge.s32.totalorder %s653_s21, 4   ;;  %s824_s15 = smov %s589_s16 }
 0x30b   : > { %s825_s16 = smov %s593_s17  ;;  %s826_s17 = smov %s665_s24 }
 0x30c   : > { %s827_s18 = smov %s653_s21  ;;  %19 = sbr.rel (!%p17_p4) target bundleno = 5 (0x5), region = 81 }
 0x313   :  { %378 = vsyncpa [#allocation3], 1 }
 0x314   :  { %380 = vsyncpa [#allocation3 + $0x1], 1 }
 0x315   :  { %381 = vsyncpa [#allocation4], 1 }
 0x316   :  { %383 = vsyncpa [#allocation4 + $0x1], 1 }

</bundles_post_ra>
